<compile_context>
chip_gen: v7x
topology: tpu7x:2x2x1
jax: 0.10.0
libtpu: 0.0.40
codegen_flags: <defaults>
</compile_context>

<pallas_src>
import math

import jax
import jax.numpy as jnp
from jax.experimental import pallas as pl
from jax.experimental.pallas import tpu as pltpu


# ----------------------------------------------------------------------------
# small helpers
# ----------------------------------------------------------------------------
def _cdiv(a: int, b: int) -> int:
    return (a + b - 1) // b


def _round_up(x: int, m: int) -> int:
    return ((x + m - 1) // m) * m


def _choose_tiles(rows: int, row_width: int) -> tuple[int, int, int]:
    """Pick (tile_rows, grid_steps, padded_rows) for a 1-D batch grid.

    Budget-aware: keep ~8 live f32 row-tiles (double-buffered output +
    elementwise temporaries) under a conservative 8 MiB VMEM budget so the
    kernel fits v5e's 16 MiB default scoped limit and v7x's 64 MiB physical
    VMEM.  Balanced: choose the step count first, then the tile, so padding
    waste is < 8 rows per step.  At least 2 steps when the batch allows it so
    the "parallel" grid axis can be split across v7x's two TensorCores.
    """
    rows = max(rows, 1)
    vmem_budget = 8 * 1024 * 1024
    bytes_per_row = row_width * 4
    tb_max = max(8, min(1024, (vmem_budget // (8 * bytes_per_row)) // 8 * 8))
    min_steps = 2 if rows >= 16 else 1
    steps = max(min_steps, _cdiv(rows, tb_max))
    tb = min(tb_max, _round_up(_cdiv(rows, steps), 8))
    steps = _cdiv(rows, tb)
    return tb, steps, steps * tb


# ----------------------------------------------------------------------------
# fused sincos building blocks (all plain VPU ops)
# ----------------------------------------------------------------------------
_TWO_OVER_PI = 0.6366197723675814          # 2/pi
_PIO2_C1 = 1.5703125                       # pi/2 head  (7 mantissa bits)
_PIO2_C2 = 4.837512969970703125e-4         # pi/2 mid   (11 mantissa bits)
_PIO2_C3 = 7.549789948768648e-8            # pi/2 tail  (f32)

_S1, _S2, _S3 = -1.6666654611e-1, 8.3321608736e-3, -1.9515295891e-4
_C1, _C2, _C3 = 4.166664568298827e-2, -1.388731625493765e-3, 2.443315711809948e-5


def _reduce_pio2(x):
    """Cody-Waite reduction: x = k*(pi/2) + r with |r| <= pi/4 (f32)."""
    k = jnp.floor(x * _TWO_OVER_PI + 0.5)
    r = x - k * _PIO2_C1
    r = r - k * _PIO2_C2
    r = r - k * _PIO2_C3
    return k, r


def _sin_cos_polys(r):
    """sin(r), cos(r) minimax polynomials on |r| <= pi/4 (Cephes sinf/cosf)."""
    z = r * r
    sp = ((_S3 * z + _S2) * z + _S1) * z * r + r
    cp = ((_C3 * z + _C2) * z + _C1) * (z * z) - 0.5 * z + 1.0
    return sp, cp


def _quadrant_select(n, sp, cp):
    """sin(r + n*pi/2) given sin(r)=sp, cos(r)=cp and integer quadrant n."""
    use_cos = (n & 1) == 1
    negate = (n & 2) == 2
    v = jnp.where(use_cos, cp, sp)
    return jnp.where(negate, -v, v)


# ----------------------------------------------------------------------------
# kernels
# ----------------------------------------------------------------------------
def _sincos_pair_kernel(time_ref, freqs_ref, out_ref):
    """half_dim % 128 == 0 path: fused sin/cos pair, two unmasked slice stores.

    time_ref : (TB, 1)     f32
    freqs_ref: (1, half)   f32, half % 128 == 0
    out_ref  : (TB, 2*half)
    """
    half = freqs_ref.shape[1]
    x = time_ref[...] * freqs_ref[...]          # (TB, half) broadcast outer product (VPU)
    k, r = _reduce_pio2(x)                      # shared range reduction
    sp, cp = _sin_cos_polys(r)                  # one sin poly + one cos poly per pair
    n = k.astype(jnp.int32)
    s = _quadrant_select(n, sp, cp)             # sin(x)
    c = _quadrant_select(n + 1, sp, cp)         # cos(x) = sin(x + pi/2), exact quadrant
    out_ref[:, :half] = s.astype(out_ref.dtype)
    out_ref[:, half:] = c.astype(out_ref.dtype)


def _sincos_full_kernel(time_ref, freqs_ref, quad_ref, out_ref):
    """Full-width path: one lane-dense store, integer per-lane quadrant offset.

    time_ref : (TB, 1) or (TB, W)  f32 (broadcast vs. pre-expanded / folded)
    freqs_ref: (1, W)              f32  ([freqs, freqs] pattern, possibly tiled)
    quad_ref : (1, W)              int32 (0 on sin lanes, 1 on cos lanes)
    out_ref  : (TB, W)
    """
    x = time_ref[...] * freqs_ref[...]          # (TB, W)
    k, r = _reduce_pio2(x)
    sp, cp = _sin_cos_polys(r)
    n = k.astype(jnp.int32) + quad_ref[...]
    out_ref[...] = _quadrant_select(n, sp, cp).astype(out_ref.dtype)


# ----------------------------------------------------------------------------
# wrapper
# ----------------------------------------------------------------------------
def sinusoidal_position_embedding(time: jax.Array, dim: int,
                                  out_dtype=jnp.float32) -> jax.Array:
    """Pallas TPU implementation of SinusoidalPositionEmbedding.forward.

    Args:
      time: (B,) timesteps (any float/int dtype; cast to f32).
      dim:  embedding dimension (even, >= 4).
      out_dtype: output dtype (default f32 = reference semantics; bf16 halves
        HBM writeback if the consumer accepts it).

    Returns:
      (B, dim) embeddings: [sin(time*freqs), cos(time*freqs)].
    """
    assert time.ndim == 1, "time must be a 1-D (batch,) array"
    assert dim % 2 == 0, "dim must be even"
    assert dim >= 4, "dim must be >= 4 (dim == 2 divides by zero in the reference)"
    half = dim // 2
    b = time.shape[0]
    if b == 0:
        return jnp.zeros((0, dim), out_dtype)

    scale = math.log(10000.0) / (half - 1)
    freqs = jnp.exp(-scale * jnp.arange(half, dtype=jnp.float32))    # (half,)
    time_f = time.astype(jnp.float32)
    cparams = pltpu.CompilerParams(
        dimension_semantics=("parallel",),
        vmem_limit_bytes=32 * 1024 * 1024,
    )

    # ---------- Path A: half is lane-aligned -> fused pair kernel ------------
    if half % 128 == 0:
        tb, steps, rows_pad = _choose_tiles(b, dim)
        t2 = time_f.reshape(b, 1)
        if rows_pad != b:
            t2 = jnp.pad(t2, ((0, rows_pad - b), (0, 0)))
        out = pl.pallas_call(
            _sincos_pair_kernel,
            out_shape=jax.ShapeDtypeStruct((rows_pad, dim), out_dtype),
            grid=(steps,),
            in_specs=[
                pl.BlockSpec((tb, 1), lambda i: (i, 0)),        # time tile
                pl.BlockSpec((1, half), lambda i: (0, 0)),      # freqs (shared)
            ],
            out_specs=pl.BlockSpec((tb, dim), lambda i: (i, 0)),
            compiler_params=cparams,
        )(t2, freqs.reshape(1, half))
        return out[:b]

    quad_base = jnp.concatenate(
        [jnp.zeros((half,), jnp.int32), jnp.ones((half,), jnp.int32)])
    freqs_base = jnp.concatenate([freqs, freqs])                     # (dim,)

    # ---------- Path B (folded): dim < 128, fold batch into the lane axis ----
    if dim < 128 and 128 % dim == 0:
        g = 128 // dim                       # batch rows folded per 128-lane row
        rows = _cdiv(b, g)
        tb, steps, rows_pad = _choose_tiles(rows, 128)
        b_pad = rows_pad * g
        t_pad = jnp.pad(time_f, (0, b_pad - b)) if b_pad != b else time_f
        # Expand each timestep across its dim-lane group -> lane-dense slab.
        t_exp = jnp.repeat(t_pad.reshape(rows_pad, g), dim, axis=1)  # (rows_pad, 128)
        freqs_row = jnp.tile(freqs_base, g).reshape(1, 128)
        quad_row = jnp.tile(quad_base, g).reshape(1, 128)
        out = pl.pallas_call(
            _sincos_full_kernel,
            out_shape=jax.ShapeDtypeStruct((rows_pad, 128), out_dtype),
            grid=(steps,),
            in_specs=[
                pl.BlockSpec((tb, 128), lambda i: (i, 0)),      # expanded time
                pl.BlockSpec((1, 128), lambda i: (0, 0)),       # freqs (shared)
                pl.BlockSpec((1, 128), lambda i: (0, 0)),       # quadrant (shared)
            ],
            out_specs=pl.BlockSpec((tb, 128), lambda i: (i, 0)),
            compiler_params=cparams,
        )(t_exp, freqs_row, quad_row)
        return out.reshape(rows_pad * g, dim)[:b]

    # ---------- Path B (full width): e.g. dim == 128 -------------------------
    tb, steps, rows_pad = _choose_tiles(b, dim)
    t2 = time_f.reshape(b, 1)
    if rows_pad != b:
        t2 = jnp.pad(t2, ((0, rows_pad - b), (0, 0)))
    out = pl.pallas_call(
        _sincos_full_kernel,
        out_shape=jax.ShapeDtypeStruct((rows_pad, dim), out_dtype),
        grid=(steps,),
        in_specs=[
            pl.BlockSpec((tb, 1), lambda i: (i, 0)),            # time tile
            pl.BlockSpec((1, dim), lambda i: (0, 0)),           # freqs (shared)
            pl.BlockSpec((1, dim), lambda i: (0, 0)),           # quadrant (shared)
        ],
        out_specs=pl.BlockSpec((tb, dim), lambda i: (i, 0)),
        compiler_params=cparams,
    )(t2, freqs_base.reshape(1, dim), quad_base.reshape(1, dim))
    return out[:b]


# ----------------------------------------------------------------------------
# pure-JAX reference (port of the PyTorch forward)
# ----------------------------------------------------------------------------
def _reference(time: jax.Array, dim: int) -> jax.Array:
    half_dim = dim // 2
    emb = math.log(10000.0) / (half_dim - 1)
    emb = jnp.exp(jnp.arange(half_dim, dtype=jnp.float32) * -emb)
    emb = time.astype(jnp.float32)[:, None] * emb[None, :]
    return jnp.concatenate([jnp.sin(emb), jnp.cos(emb)], axis=-1)


if __name__ == "__main__":
    key = jax.random.PRNGKey(0)
    batch, dim = 8, 32      # small example: diffusion time-embedding width 32

    # Deterministic example timesteps (e.g. diffusion steps in [0, 1000)).
    time = jax.random.uniform(key, (batch,), dtype=jnp.float32) * 1000.0

    out = sinusoidal_position_embedding(time, dim)       # folded lane-dense path
    out = jax.block_until_ready(out)
    ref = _reference(time, dim)
    assert out.shape == (batch, dim)
    assert out.dtype == jnp.float32
    assert jnp.allclose(out, ref, atol=2e-5, rtol=2e-5)

    # Exercise the other code paths at small shapes:
    #   dim=128 -> full-width quadrant kernel; dim=256 -> fused pair kernel.
    for b2, d2 in ((5, 128), (9, 256)):
        t2 = jax.random.uniform(jax.random.PRNGKey(1), (b2,), dtype=jnp.float32) * 1000.0
        o2 = jax.block_until_ready(sinusoidal_position_embedding(t2, d2))
        assert o2.shape == (b2, d2)
        assert jnp.allclose(o2, _reference(t2, d2), atol=2e-5, rtol=2e-5)

    print("KERNEL_OK")
</pallas_src>

<mosaic_0001>
module attributes {stable_mosaic.version = 11 : i64} {
  func.func @_sincos_full_kernel(%arg0: i32, %arg1: memref<8x128xf32, #tpu.memory_space<vmem>>, %arg2: memref<1x128xf32, #tpu.memory_space<vmem>>, %arg3: memref<1x128xi32, #tpu.memory_space<vmem>>, %arg4: memref<8x128xf32, #tpu.memory_space<vmem>>) attributes {dimension_semantics = [#tpu.dimension_semantics<parallel>], iteration_bounds = array<i64: 1>, scalar_prefetch = 0 : i64, scratch_operands = 0 : i64, tpu.core_type = #tpu.core_type<tc>, window_params = [{transform_indices = @transform_0, window_bounds = array<i64: 8, 128>}, {pipeline_mode = #tpu.pipeline_mode<synchronous>, transform_indices = @transform_1, window_bounds = array<i64: 1, 128>}, {pipeline_mode = #tpu.pipeline_mode<synchronous>, transform_indices = @transform_2, window_bounds = array<i64: 1, 128>}, {transform_indices = @transform_3, window_bounds = array<i64: 8, 128>}]} {
    %c0 = arith.constant 0 : index
    %c0_0 = arith.constant 0 : index
    %0 = vector.load %arg1[%c0, %c0_0] : memref<8x128xf32, #tpu.memory_space<vmem>>, vector<8x128xf32>
    %c0_1 = arith.constant 0 : index
    %c0_2 = arith.constant 0 : index
    %1 = vector.load %arg2[%c0_1, %c0_2] : memref<1x128xf32, #tpu.memory_space<vmem>>, vector<1x128xf32>
    %2 = vector.broadcast %1 : vector<1x128xf32> to vector<8x128xf32>
    %3 = arith.mulf %0, %2 : vector<8x128xf32>
    %cst = arith.constant 0.636619746 : f32
    %4 = vector.broadcast %cst : f32 to vector<8x128xf32>
    %5 = arith.mulf %3, %4 : vector<8x128xf32>
    %cst_3 = arith.constant 5.000000e-01 : f32
    %6 = vector.broadcast %cst_3 : f32 to vector<8x128xf32>
    %7 = arith.addf %5, %6 : vector<8x128xf32>
    %8 = math.floor %7 : vector<8x128xf32>
    %cst_4 = arith.constant 1.5703125 : f32
    %9 = vector.broadcast %cst_4 : f32 to vector<8x128xf32>
    %10 = arith.mulf %8, %9 : vector<8x128xf32>
    %11 = arith.subf %3, %10 : vector<8x128xf32>
    %cst_5 = arith.constant 4.83751297E-4 : f32
    %12 = vector.broadcast %cst_5 : f32 to vector<8x128xf32>
    %13 = arith.mulf %8, %12 : vector<8x128xf32>
    %14 = arith.subf %11, %13 : vector<8x128xf32>
    %cst_6 = arith.constant 7.549790e-08 : f32
    %15 = vector.broadcast %cst_6 : f32 to vector<8x128xf32>
    %16 = arith.mulf %8, %15 : vector<8x128xf32>
    %17 = arith.subf %14, %16 : vector<8x128xf32>
    %18 = arith.mulf %17, %17 : vector<8x128xf32>
    %cst_7 = arith.constant -1.95152956E-4 : f32
    %19 = vector.broadcast %cst_7 : f32 to vector<8x128xf32>
    %20 = arith.mulf %19, %18 : vector<8x128xf32>
    %cst_8 = arith.constant 0.00833216123 : f32
    %21 = vector.broadcast %cst_8 : f32 to vector<8x128xf32>
    %22 = arith.addf %20, %21 : vector<8x128xf32>
    %23 = arith.mulf %22, %18 : vector<8x128xf32>
    %cst_9 = arith.constant -0.166666552 : f32
    %24 = vector.broadcast %cst_9 : f32 to vector<8x128xf32>
    %25 = arith.addf %23, %24 : vector<8x128xf32>
    %26 = arith.mulf %25, %18 : vector<8x128xf32>
    %27 = arith.mulf %26, %17 : vector<8x128xf32>
    %28 = arith.addf %27, %17 : vector<8x128xf32>
    %cst_10 = arith.constant 2.44331568E-5 : f32
    %29 = vector.broadcast %cst_10 : f32 to vector<8x128xf32>
    %30 = arith.mulf %29, %18 : vector<8x128xf32>
    %cst_11 = arith.constant -0.00138873165 : f32
    %31 = vector.broadcast %cst_11 : f32 to vector<8x128xf32>
    %32 = arith.addf %30, %31 : vector<8x128xf32>
    %33 = arith.mulf %32, %18 : vector<8x128xf32>
    %cst_12 = arith.constant 0.0416666456 : f32
    %34 = vector.broadcast %cst_12 : f32 to vector<8x128xf32>
    %35 = arith.addf %33, %34 : vector<8x128xf32>
    %36 = arith.mulf %18, %18 : vector<8x128xf32>
    %37 = arith.mulf %35, %36 : vector<8x128xf32>
    %cst_13 = arith.constant 5.000000e-01 : f32
    %38 = vector.broadcast %cst_13 : f32 to vector<8x128xf32>
    %39 = arith.mulf %38, %18 : vector<8x128xf32>
    %40 = arith.subf %37, %39 : vector<8x128xf32>
    %cst_14 = arith.constant 1.000000e+00 : f32
    %41 = vector.broadcast %cst_14 : f32 to vector<8x128xf32>
    %42 = arith.addf %40, %41 : vector<8x128xf32>
    %43 = arith.fptosi %8 : vector<8x128xf32> to vector<8x128xi32>
    %c0_15 = arith.constant 0 : index
    %c0_16 = arith.constant 0 : index
    %44 = vector.load %arg3[%c0_15, %c0_16] : memref<1x128xi32, #tpu.memory_space<vmem>>, vector<1x128xi32>
    %45 = vector.broadcast %44 : vector<1x128xi32> to vector<8x128xi32>
    %46 = arith.addi %43, %45 : vector<8x128xi32>
    %c1_i32 = arith.constant 1 : i32
    %47 = vector.broadcast %c1_i32 : i32 to vector<8x128xi32>
    %48 = arith.andi %46, %47 : vector<8x128xi32>
    %c1_i32_17 = arith.constant 1 : i32
    %49 = vector.broadcast %c1_i32_17 : i32 to vector<8x128xi32>
    %50 = arith.cmpi eq, %48, %49 : vector<8x128xi32>
    %c2_i32 = arith.constant 2 : i32
    %51 = vector.broadcast %c2_i32 : i32 to vector<8x128xi32>
    %52 = arith.andi %46, %51 : vector<8x128xi32>
    %c2_i32_18 = arith.constant 2 : i32
    %53 = vector.broadcast %c2_i32_18 : i32 to vector<8x128xi32>
    %54 = arith.cmpi eq, %52, %53 : vector<8x128xi32>
    %55 = arith.select %50, %42, %28 : vector<8x128xi1>, vector<8x128xf32>
    %cst_19 = arith.constant 0.000000e+00 : f32
    %56 = vector.broadcast %cst_19 : f32 to vector<8x128xf32>
    %57 = arith.subf %56, %55 : vector<8x128xf32>
    %58 = arith.select %54, %57, %55 : vector<8x128xi1>, vector<8x128xf32>
    %c0_20 = arith.constant 0 : index
    %c0_21 = arith.constant 0 : index
    %59 = vector.load %arg4[%c0_20, %c0_21] : memref<8x128xf32, #tpu.memory_space<vmem>>, vector<8x128xf32>
    tpu.vector_store %arg4[%c0_20, %c0_21], %58 {strides = array<i32>} : memref<8x128xf32, #tpu.memory_space<vmem>>, vector<8x128xf32>,
    return
  }
  func.func @transform_0(%arg0: i32) -> (i32, i32) {
    %c0_i32 = arith.constant 0 : i32
    %c0_i32_0 = arith.constant 0 : i32
    return %arg0, %c0_i32 : i32, i32
  }
  func.func @transform_1(%arg0: i32) -> (i32, i32) {
    %c0_i32 = arith.constant 0 : i32
    %c0_i32_0 = arith.constant 0 : i32
    %c0_i32_1 = arith.constant 0 : i32
    return %c0_i32, %c0_i32_0 : i32, i32
  }
  func.func @transform_2(%arg0: i32) -> (i32, i32) {
    %c0_i32 = arith.constant 0 : i32
    %c0_i32_0 = arith.constant 0 : i32
    %c0_i32_1 = arith.constant 0 : i32
    return %c0_i32, %c0_i32_0 : i32, i32
  }
  func.func @transform_3(%arg0: i32) -> (i32, i32) {
    %c0_i32 = arith.constant 0 : i32
    %c0_i32_0 = arith.constant 0 : i32
    return %arg0, %c0_i32 : i32, i32
  }
}

</mosaic_0001>

<bundles_post_ra>
// kernel: tpu_custom_call.1
= control target key start
LH: loop header
LB: loop body
LE: loop exit
PB: predicated region body
PF: predicated region fallthrough
CT: control target
= control target key end

     0   :  { %8 = vsyncpa [#allocation3], 0  ;;  %s198_s0 = inlined_call_operand.hbm [shape: f32[8,128], index: 0, kind: input, shape index: {}]   ;;  %s199_s1 = inlined_call_operand.vmem [shape: f32[1,128], index: 1, kind: input, shape index: {}]   ;;  %s200_s2 = inlined_call_operand.vmem [shape: s32[1,128], index: 2, kind: input, shape index: {}]   ;;  %s201_s3 = inlined_call_operand.hbm [shape: f32[8,128], index: 3, kind: output, shape index: {}]  }
   0x1   :  { %9 = vsyncpa [#allocation4], 0  ;;  %s146_s12 = smov [#allocation2]   ;;  %s98_s16 = scalar_lea.hbm %s198_s0, 128 }
   0x2   :  { %s16_s13 = sshll.u32 %s146_s12, 4  ;;  %p99_p0 = scmp.ne.s32.totalorder %s198_s0, %s98_s16  ;;  %s17_s13 = int_to_ptr.vmem [resolvable:$true] %s16_s13 }
   0x3   :  { %p102_p1 = scmp.lt.u32.totalorder %s98_s16, %s198_s0 }
   0x5   :  { %p104_p2 = pnand %p102_p1, %p99_p0 }
   0x7   :  { %107 = shalt.err (!%p104_p2)
}
   0x8   :  { %s108_s21 = scalar_lea.vmem %s17_s13, 128  ;;  %p113_p4 = scmp.lt.s32.totalorder %s17_s13, %s17_s13 }
   0x9   :  { %p109_p3 = scmp.ne.s32.totalorder %s17_s13, %s108_s21  ;;  %p114_p5 = scmp.lt.s32.totalorder %s108_s21, %s108_s21 }
   0xb   :  { %p115_p6 = por %p114_p5, %p113_p4 }
   0xd   :  { %p116_p7 = pnand %p115_p6, %p109_p3 }
   0xf   :  { %119 = shalt.err (!%p116_p7)
}
  0x10   :  { %19 = dma.hbm_to_vmem [thread:$0]  %s198_s0, 128, %s17_s13, [#allocation3]  }
  0x11   :  { %142 = dma.done.wait [#allocation3], 128  }
  0x12   :  { %143 = vsyncadd [#allocation3], 4294967168  ;;  %v27_v0 = vld [vmem:[#allocation2] sm:$0xff] }
  0x13   :  { %v92_v1 = vld [vmem:[%s199_s1] ss:$0 sm:$0xff]  ;;  %s147_s1 = smov [#allocation5]  }
  0x14   :  { %v35_v2 = vmul.f32 %v92_v1, %v27_v0  ;;  %v93_v17 = vld [vmem:[%s200_s2] ss:$0 sm:$0xff]  ;;  %s83_s2 = sshll.u32 %s147_s1, 4  ;;  %s84_s2 = int_to_ptr.vmem [resolvable:$true] %s83_s2 }
  0x15   :  { %s120_s27 = scalar_lea.vmem %s84_s2, 128  ;;  %p125_p9 = scmp.lt.s32.totalorder %s84_s2, %s84_s2 }
  0x16   :  { %v36_v3 = vmul.f32 0.63661975, %v35_v2  ;;  %p121_p8 = scmp.ne.s32.totalorder %s84_s2, %s120_s27  ;;  %p126_p10 = scmp.lt.s32.totalorder %s120_s27, %s120_s27 }
  0x18   :  { %v37_v4 = vadd.f32 0.5, %v36_v3  ;;  %p127_p11 = por %p126_p10, %p125_p9 }
  0x1a   :  { %v38_v5 = vfloor.f32 %v37_v4  ;;  %p128_p12 = pnand %p127_p11, %p121_p8 }
  0x1c   :  { %v39_v6 = vmul.f32 1.5703125, %v38_v5  ;;  %v41_v7 = vmul.f32 0.0004837513, %v38_v5  ;;  %v43_v9 = vmul.f32 7.54979e-08, %v38_v5  ;;  %v94_v11 = vtrunc.f32 %v38_v5 }
  0x1e   :  { %v40_v8 = vsub.f32 %v35_v2, %v39_v6  ;;  %v95_v14 = vcvt.f32.s32 %v94_v11 }
  0x20   :  { %v42_v10 = vsub.f32 %v40_v8, %v41_v7  ;;  %v68_v20 = vadd.s32 %v95_v14, %v93_v17 }
  0x22   :  { %v44_v12 = vsub.f32 %v42_v10, %v43_v9  ;;  %v69_v27 = vand.u32 1, %v68_v20  ;;  %v71_v32 = vand.u32 2, %v68_v20 }
  0x24   :  { %v45_v13 = vmul.f32 %v44_v12, %v44_v12  ;;  %vm70_vm0 = vcmp.eq.s32.totalorder %v69_v27, 1  ;;  %vm72_vm1 = vcmp.eq.s32.totalorder %v71_v32, 2 }
  0x26   :  { %v46_v15 = vmul.f32 -0.00019515296, %v45_v13  ;;  %v53_v16 = vmul.f32 2.4433157e-05, %v45_v13  ;;  %v57_v23 = vmul.f32 %v45_v13, %v45_v13  ;;  %v59_v26 = vmul.f32 0.5, %v45_v13 }
  0x28   :  { %v47_v18 = vadd.f32 0.008332161, %v46_v15  ;;  %v54_v19 = vadd.f32 -0.0013887316, %v53_v16 }
  0x2a   :  { %v48_v21 = vmul.f32 %v47_v18, %v45_v13  ;;  %v55_v22 = vmul.f32 %v54_v19, %v45_v13 }
  0x2c   :  { %v49_v24 = vadd.f32 -0.16666655, %v48_v21  ;;  %v56_v25 = vadd.f32 0.041666646, %v55_v22 }
  0x2e   :  { %v50_v28 = vmul.f32 %v49_v24, %v45_v13  ;;  %v58_v29 = vmul.f32 %v57_v23, %v56_v25 }
  0x30   :  { %v51_v30 = vmul.f32 %v50_v28, %v44_v12  ;;  %v60_v31 = vsub.f32 %v58_v29, %v59_v26 }
  0x32   :  { %v52_v33 = vadd.f32 %v51_v30, %v44_v12  ;;  %v61_v34 = vadd.f32 1.0, %v60_v31 }
  0x34   :  { %v73_v35 = vsel %vm70_vm0, %v61_v34, %v52_v33 }
  0x35   :  { %v74_v36 = vsub.f32 0.0, %v73_v35 }
  0x37   :  { %v75_v37 = vsel %vm72_vm1, %v74_v36, %v73_v35 }
  0x38   :  { %76 = vst [vmem:[#allocation5] sm:$0xff] %v75_v37 }
  0x39   :  { %131 = shalt.err (!%p128_p12)
}
  0x3a   :  { %s132_s30 = scalar_lea.hbm %s201_s3, 128 }
  0x3b   :  { %p133_p13 = scmp.ne.s32.totalorder %s201_s3, %s132_s30  ;;  %p136_p0 = scmp.lt.u32.totalorder %s132_s30, %s201_s3 }
  0x3d   :  { %p138_p1 = pnand %p136_p0, %p133_p13 }
  0x3f   :  { %141 = shalt.err (!%p138_p1)
}
  0x40   :  { %86 = dma.vmem_to_hbm [thread:$0]  %s84_s2, 128, %s201_s3, [#allocation4]  }
  0x41   :  { %144 = dma.done.wait [#allocation4], 128  }
  0x42   :  { %145 = vsyncadd [#allocation4], 4294967168 }
  0x43   :  { %90 = vsyncpa [#allocation3], 1 }
  0x44   :  { %91 = vsyncpa [#allocation4], 1 }

</bundles_post_ra>
